<compile_context>
chip_gen: v5e
topology: v5e:2x2
jax: 0.10.0
libtpu: 0.0.40
codegen_flags: <defaults>
</compile_context>

<pallas_src>
import functools

import numpy as np
import jax
import jax.numpy as jnp
from jax.experimental import pallas as pl
from jax.experimental.pallas import tpu as pltpu

LN_EPS = 1e-12                    # BERT LayerNorm eps
_SQRT_HALF = 0.7071067811865476   # 1/sqrt(2)


def _round_up(x, m):
  return (x + m - 1) // m * m


@functools.lru_cache(maxsize=1)
def _vmem_limit_bytes():
  """Generation-aware scoped-VMEM limit: 3/4 of physical, capped at 100 MiB.
  v7x (64 MiB physical) -> 48 MiB; v5e/v6e (128 MiB) -> 96 MiB."""
  cap = 128 * 1024 * 1024
  try:
    cap = int(getattr(pltpu.get_tpu_info(), "vmem_capacity_bytes", cap))
  except Exception:
    pass
  return min(cap * 3 // 4, 100 * 1024 * 1024)


def _transform_kernel(x_ref, wt_ref, bt_ref, g_ref, beta_ref, h_ref):
  """Dense (H -> H, bf16 operands / f32 accumulation) + exact GELU + LayerNorm."""
  x = x_ref[...].astype(jnp.bfloat16)
  h = jnp.dot(x, wt_ref[...], preferred_element_type=jnp.float32) + bt_ref[...]
  # Exact (erf-based) GELU, matching transformers' "gelu".
  h = 0.5 * h * (1.0 + jax.lax.erf(h * _SQRT_HALF))
  # Single-pass LayerNorm stats: var = E[h^2] - mu^2 (one XLU reduction fewer).
  mu = jnp.mean(h, axis=-1, keepdims=True)
  ms = jnp.mean(h * h, axis=-1, keepdims=True)
  var = jnp.maximum(ms - mu * mu, 0.0)
  h = (h - mu) * jax.lax.rsqrt(var + LN_EPS)
  h = h * g_ref[...] + beta_ref[...]
  h_ref[...] = h.astype(h_ref.dtype)        # bf16 for cheap decoder streaming


def _decoder_kernel_tiled(h_ref, wd_ref, bias_ref, o_ref):
  """logits tile = h_tile @ wd_tile + bias_tile (bf16 in, f32 accumulation)."""
  o_ref[...] = (jnp.dot(h_ref[...], wd_ref[...],
                        preferred_element_type=jnp.float32)
                + bias_ref[...]).astype(o_ref.dtype)


def _decoder_kernel_resident(h_ref, wd_ref, bias_ref, o_ref, *, tm):
  """Same, but h is fully VMEM-resident; slice the row tile in-kernel."""
  i = pl.program_id(1)
  start = pl.multiple_of(i * tm, tm)
  h_tile = h_ref[pl.ds(start, tm), :]
  o_ref[...] = (jnp.dot(h_tile, wd_ref[...],
                        preferred_element_type=jnp.float32)
                + bias_ref[...]).astype(o_ref.dtype)


def prepare_mlm_head_params(params):
  """One-time parameter prep (kept OUT of the jitted per-call path):
  pre-transpose both weights and cast them to bf16 for MXU/HBM efficiency.
  No vocab padding is needed anymore (pl.cdiv grids + masked edge blocks)."""
  H = params["transform_w"].shape[0]
  V = params["decoder_w"].shape[0]
  return {
      "wt": jnp.asarray(params["transform_w"]).T.astype(jnp.bfloat16),   # [H, H]
      "bt": jnp.asarray(params["transform_b"], jnp.float32).reshape(1, H),
      "gamma": jnp.asarray(params["ln_gamma"], jnp.float32).reshape(1, H),
      "beta": jnp.asarray(params["ln_beta"], jnp.float32).reshape(1, H),
      "wd": jnp.asarray(params["decoder_w"]).T.astype(jnp.bfloat16),     # [H, V]
      "bias": jnp.asarray(params["bias"], jnp.float32).reshape(1, V),    # [1, V]
  }


@functools.partial(jax.jit, static_argnames=("tm", "tv", "logits_dtype"))
def bert_only_mlm_head(hidden_states, prepared, *, tm=512, tv=2048,
                       logits_dtype=jnp.bfloat16):
  """hidden_states: [B, S, H] -> logits [B, S, V] (bf16 by default).

  tm: row tile (multiple of 16; 512 keeps the MXU fed and the grid short).
  tv: vocab tile (multiple of 128; 2048 is v7x-safe, 4096 also fine on v5e/v6e).
  logits_dtype: bf16 halves the [M, V] writeback; f32 matches the module dtype.
  """
  B, S, H = hidden_states.shape
  M = B * S
  V = prepared["wd"].shape[1]
  vmem_limit = _vmem_limit_bytes()

  # Row tile: multiple of 16 (bf16 sublane packing), clamped to the problem.
  tm_eff = _round_up(min(tm, M), 16)
  m_tiles = pl.cdiv(M, tm_eff)
  m_pad = m_tiles * tm_eff          # h row count (full blocks for the decoder)

  # Vocab tile: multiple of 128, or the full vocab when it already fits.
  tv_eff = V if V <= tv else max((tv // 128) * 128, 128)
  v_tiles = pl.cdiv(V, tv_eff)

  x = hidden_states.reshape(M, H)

  # ---- Kernel 1: transform (dense + GELU + LayerNorm) -> h bf16 [m_pad, H].
  # The ragged last x block reads stale rows; they only produce garbage in h's
  # padding rows, whose decoder outputs are masked on store.
  h = pl.pallas_call(
      _transform_kernel,
      out_shape=jax.ShapeDtypeStruct((m_pad, H), jnp.bfloat16),
      grid_spec=pltpu.PrefetchScalarGridSpec(
          num_scalar_prefetch=0,
          grid=(m_tiles,),
          in_specs=[
              pl.BlockSpec((tm_eff, H), lambda i: (i, 0)),   # x row tile
              pl.BlockSpec((H, H), lambda i: (0, 0)),        # transform W^T (bf16)
              pl.BlockSpec((1, H), lambda i: (0, 0)),        # transform bias
              pl.BlockSpec((1, H), lambda i: (0, 0)),        # LN gamma
              pl.BlockSpec((1, H), lambda i: (0, 0)),        # LN beta
          ],
          out_specs=pl.BlockSpec((tm_eff, H), lambda i: (i, 0)),
      ),
      compiler_params=pltpu.CompilerParams(
          dimension_semantics=("parallel",),
          vmem_limit_bytes=vmem_limit),
  )(x, prepared["wt"], prepared["bt"], prepared["gamma"], prepared["beta"])

  # ---- Kernel 2: decoder matmul + bias.  Vocab is the OUTER grid axis so each
  # [H, tv] weight tile is streamed from HBM exactly once.  The output is
  # written at its true (M, V) shape; ragged edge blocks (rows >= M, vocab
  # columns >= V) are masked by Pallas, so no post-kernel slice copy.
  out_itemsize = np.dtype(logits_dtype).itemsize
  h_bytes = m_pad * H * 2
  resident_vmem = (2 * h_bytes                               # whole h
                   + 2 * H * tv_eff * 2                      # wd tile (bf16)
                   + 2 * tm_eff * tv_eff * out_itemsize      # out tile
                   + 2 * tv_eff * 4)                         # bias tile
  use_resident = resident_vmem <= (vmem_limit * 4) // 5      # keep headroom

  if use_resident:
    # h fully VMEM-resident: constant index_map -> DMA'd once, no re-streaming.
    decoder_kernel = functools.partial(_decoder_kernel_resident, tm=tm_eff)
    h_spec = pl.BlockSpec((m_pad, H), lambda j, i: (0, 0))
  else:
    decoder_kernel = _decoder_kernel_tiled
    h_spec = pl.BlockSpec((tm_eff, H), lambda j, i: (i, 0))

  logits = pl.pallas_call(
      decoder_kernel,
      out_shape=jax.ShapeDtypeStruct((M, V), logits_dtype),
      grid_spec=pltpu.PrefetchScalarGridSpec(
          num_scalar_prefetch=0,
          grid=(v_tiles, m_tiles),
          in_specs=[
              h_spec,                                           # h (bf16)
              pl.BlockSpec((H, tv_eff), lambda j, i: (0, j)),   # decoder W^T tile
              pl.BlockSpec((1, tv_eff), lambda j, i: (0, j)),   # output bias tile
          ],
          out_specs=pl.BlockSpec((tm_eff, tv_eff), lambda j, i: (i, j)),
      ),
      compiler_params=pltpu.CompilerParams(
          dimension_semantics=("parallel", "parallel"),
          vmem_limit_bytes=vmem_limit),
  )(h, prepared["wd"], prepared["bias"])

  return logits.reshape(B, S, V)


def _reference(hidden_states, params):
  """Plain-JAX f32 reference for sanity checking."""
  h = hidden_states @ params["transform_w"].T + params["transform_b"]
  h = 0.5 * h * (1.0 + jax.lax.erf(h * _SQRT_HALF))
  mu = jnp.mean(h, axis=-1, keepdims=True)
  var = jnp.mean(jnp.square(h - mu), axis=-1, keepdims=True)
  h = (h - mu) / jnp.sqrt(var + LN_EPS)
  h = h * params["ln_gamma"] + params["ln_beta"]
  return h @ params["decoder_w"].T + params["bias"]


if __name__ == "__main__":
  # Small, module-consistent shapes: batch=2, seq=8, hidden=32, vocab=512.
  B, S, H, V = 2, 8, 32, 512

  key = jax.random.PRNGKey(0)
  k_x, k_tw, k_tb, k_emb = jax.random.split(key, 4)

  hidden_states = jax.random.normal(k_x, (B, S, H), dtype=jnp.float32)

  params = {
      # BertPredictionHeadTransform.dense
      "transform_w": 0.02 * jax.random.normal(k_tw, (H, H), dtype=jnp.float32),
      "transform_b": 0.02 * jax.random.normal(k_tb, (H,), dtype=jnp.float32),
      # BertPredictionHeadTransform.LayerNorm
      "ln_gamma": jnp.ones((H,), dtype=jnp.float32),
      "ln_beta": jnp.zeros((H,), dtype=jnp.float32),
      # decoder.weight tied to bert_model_embedding_weights [V, H]
      "decoder_w": 0.02 * jax.random.normal(k_emb, (V, H), dtype=jnp.float32),
      # nn.Parameter(torch.zeros(V))
      "bias": jnp.zeros((V,), dtype=jnp.float32),
  }

  prepared = prepare_mlm_head_params(params)
  out = bert_only_mlm_head(hidden_states, prepared)   # defaults: tm=512, tv=2048, bf16 logits
  out = jax.block_until_ready(out)

  ref = _reference(hidden_states, params)
  assert out.shape == (B, S, V)
  # bf16 h / bf16 weights / bf16 logits (f32 MXU accumulation) -> slightly
  # looser tolerance than a pure-f32 pipeline.
  assert jnp.allclose(out.astype(jnp.float32), ref, atol=3e-2, rtol=3e-2), \
      "mismatch vs reference"

  print("KERNEL_OK")
</pallas_src>

<mosaic_0001>
module attributes {stable_mosaic.version = 11 : i64} {
  func.func @_decoder_kernel_resident(%arg0: i32, %arg1: i32, %arg2: memref<16x32xbf16, #tpu.memory_space<vmem>>, %arg3: memref<32x512xbf16, #tpu.memory_space<vmem>>, %arg4: memref<1x512xf32, #tpu.memory_space<vmem>>, %arg5: memref<16x512xbf16, #tpu.memory_space<vmem>>) attributes {dimension_semantics = [#tpu.dimension_semantics<parallel>, #tpu.dimension_semantics<parallel>], iteration_bounds = array<i64: 1, 1>, scalar_prefetch = 0 : i64, scratch_operands = 0 : i64, tpu.core_type = #tpu.core_type<tc>, window_params = [{pipeline_mode = #tpu.pipeline_mode<synchronous>, transform_indices = @transform_0, window_bounds = array<i64: 16, 32>}, {transform_indices = @transform_1, window_bounds = array<i64: 32, 512>}, {transform_indices = @transform_2, window_bounds = array<i64: 1, 512>}, {transform_indices = @transform_3, window_bounds = array<i64: 16, 512>}]} {
    %c16_i32 = arith.constant 16 : i32
    %0 = arith.muli %arg1, %c16_i32 : i32
    %1 = tpu.assume_multiple %0, 16 : i32
    %2 = arith.index_cast %1 : i32 to index
    %c0 = arith.constant 0 : index
    %3 = vector.load %arg2[%2, %c0] : memref<16x32xbf16, #tpu.memory_space<vmem>>, vector<16x32xbf16>
    %c0_0 = arith.constant 0 : index
    %c0_1 = arith.constant 0 : index
    %4 = vector.load %arg3[%c0_0, %c0_1] : memref<32x512xbf16, #tpu.memory_space<vmem>>, vector<32x512xbf16>
    %cst = arith.constant dense<0.000000e+00> : vector<16x512xf32>
    %5 = tpu.matmul %3, %4, %cst {dimension_numbers = #tpu.dot_dimension_numbers<[1], [0], [0], [1], [0, 0, 1, 1], [], []>} : vector<16x32xbf16>, vector<32x512xbf16>, vector<16x512xf32> -> vector<16x512xf32>
    %c0_2 = arith.constant 0 : index
    %c0_3 = arith.constant 0 : index
    %6 = vector.load %arg4[%c0_2, %c0_3] : memref<1x512xf32, #tpu.memory_space<vmem>>, vector<1x512xf32>
    %7 = vector.broadcast %6 : vector<1x512xf32> to vector<16x512xf32>
    %8 = arith.addf %5, %7 : vector<16x512xf32>
    %9 = arith.truncf %8 : vector<16x512xf32> to vector<16x512xbf16>
    %c0_4 = arith.constant 0 : index
    %c0_5 = arith.constant 0 : index
    %10 = vector.load %arg5[%c0_4, %c0_5] : memref<16x512xbf16, #tpu.memory_space<vmem>>, vector<16x512xbf16>
    tpu.vector_store %arg5[%c0_4, %c0_5], %9 {strides = array<i32>} : memref<16x512xbf16, #tpu.memory_space<vmem>>, vector<16x512xbf16>,
    return
  }
  func.func @transform_0(%arg0: i32, %arg1: i32) -> (i32, i32) {
    %c0_i32 = arith.constant 0 : i32
    %c0_i32_0 = arith.constant 0 : i32
    %c0_i32_1 = arith.constant 0 : i32
    return %c0_i32, %c0_i32_0 : i32, i32
  }
  func.func @transform_1(%arg0: i32, %arg1: i32) -> (i32, i32) {
    %c0_i32 = arith.constant 0 : i32
    %c0_i32_0 = arith.constant 0 : i32
    return %c0_i32, %arg0 : i32, i32
  }
  func.func @transform_2(%arg0: i32, %arg1: i32) -> (i32, i32) {
    %c0_i32 = arith.constant 0 : i32
    %c0_i32_0 = arith.constant 0 : i32
    return %c0_i32, %arg0 : i32, i32
  }
  func.func @transform_3(%arg0: i32, %arg1: i32) -> (i32, i32) {
    %c0_i32 = arith.constant 0 : i32
    return %arg1, %arg0 : i32, i32
  }
}

module attributes {stable_mosaic.version = 11 : i64} {
  func.func @_transform_kernel(%arg0: i32, %arg1: memref<16x32xf32, #tpu.memory_space<vmem>>, %arg2: memref<32x32xbf16, #tpu.memory_space<vmem>>, %arg3: memref<1x32xf32, #tpu.memory_space<vmem>>, %arg4: memref<1x32xf32, #tpu.memory_space<vmem>>, %arg5: memref<1x32xf32, #tpu.memory_space<vmem>>, %arg6: memref<16x32xbf16, #tpu.memory_space<vmem>>) attributes {dimension_semantics = [#tpu.dimension_semantics<parallel>], iteration_bounds = array<i64: 1>, scalar_prefetch = 0 : i64, scratch_operands = 0 : i64, tpu.core_type = #tpu.core_type<tc>, window_params = [{transform_indices = @transform_0, window_bounds = array<i64: 16, 32>}, {pipeline_mode = #tpu.pipeline_mode<synchronous>, transform_indices = @transform_1, window_bounds = array<i64: 32, 32>}, {pipeline_mode = #tpu.pipeline_mode<synchronous>, transform_indices = @transform_2, window_bounds = array<i64: 1, 32>}, {pipeline_mode = #tpu.pipeline_mode<synchronous>, transform_indices = @transform_3, window_bounds = array<i64: 1, 32>}, {pipeline_mode = #tpu.pipeline_mode<synchronous>, transform_indices = @transform_4, window_bounds = array<i64: 1, 32>}, {transform_indices = @transform_5, window_bounds = array<i64: 16, 32>}]} {
    %c0 = arith.constant 0 : index
    %c0_0 = arith.constant 0 : index
    %0 = vector.load %arg1[%c0, %c0_0] : memref<16x32xf32, #tpu.memory_space<vmem>>, vector<16x32xf32>
    %1 = arith.truncf %0 : vector<16x32xf32> to vector<16x32xbf16>
    %c0_1 = arith.constant 0 : index
    %c0_2 = arith.constant 0 : index
    %2 = vector.load %arg2[%c0_1, %c0_2] : memref<32x32xbf16, #tpu.memory_space<vmem>>, vector<32x32xbf16>
    %cst = arith.constant dense<0.000000e+00> : vector<16x32xf32>
    %3 = tpu.matmul %1, %2, %cst {dimension_numbers = #tpu.dot_dimension_numbers<[1], [0], [0], [1], [0, 0, 1, 1], [], []>} : vector<16x32xbf16>, vector<32x32xbf16>, vector<16x32xf32> -> vector<16x32xf32>
    %c0_3 = arith.constant 0 : index
    %c0_4 = arith.constant 0 : index
    %4 = vector.load %arg3[%c0_3, %c0_4] : memref<1x32xf32, #tpu.memory_space<vmem>>, vector<1x32xf32>
    %5 = vector.broadcast %4 : vector<1x32xf32> to vector<16x32xf32>
    %6 = arith.addf %3, %5 : vector<16x32xf32>
    %cst_5 = arith.constant 5.000000e-01 : f32
    %7 = vector.broadcast %cst_5 : f32 to vector<16x32xf32>
    %8 = arith.mulf %7, %6 : vector<16x32xf32>
    %cst_6 = arith.constant 0.707106769 : f32
    %9 = vector.broadcast %cst_6 : f32 to vector<16x32xf32>
    %10 = arith.mulf %6, %9 : vector<16x32xf32>
    %11 = math.erf %10 : vector<16x32xf32>
    %cst_7 = arith.constant 1.000000e+00 : f32
    %12 = vector.broadcast %cst_7 : f32 to vector<16x32xf32>
    %13 = arith.addf %12, %11 : vector<16x32xf32>
    %14 = arith.mulf %8, %13 : vector<16x32xf32>
    %cst_8 = arith.constant dense<0.000000e+00> : vector<16xf32>
    %15 = vector.multi_reduction <add>, %14, %cst_8 [1] : vector<16x32xf32> to vector<16xf32>
    %16 = vector.shape_cast %15 : vector<16xf32> to vector<16x1xf32>
    %cst_9 = arith.constant 3.200000e+01 : f32
    %17 = vector.broadcast %cst_9 : f32 to vector<16x1xf32>
    %18 = arith.divf %16, %17 : vector<16x1xf32>
    %19 = arith.mulf %14, %14 : vector<16x32xf32>
    %cst_10 = arith.constant dense<0.000000e+00> : vector<16xf32>
    %20 = vector.multi_reduction <add>, %19, %cst_10 [1] : vector<16x32xf32> to vector<16xf32>
    %21 = vector.shape_cast %20 : vector<16xf32> to vector<16x1xf32>
    %cst_11 = arith.constant 3.200000e+01 : f32
    %22 = vector.broadcast %cst_11 : f32 to vector<16x1xf32>
    %23 = arith.divf %21, %22 : vector<16x1xf32>
    %24 = arith.mulf %18, %18 : vector<16x1xf32>
    %25 = arith.subf %23, %24 : vector<16x1xf32>
    %cst_12 = arith.constant 0.000000e+00 : f32
    %26 = vector.broadcast %cst_12 : f32 to vector<16x1xf32>
    %27 = arith.maximumf %25, %26 : vector<16x1xf32>
    %28 = vector.broadcast %18 : vector<16x1xf32> to vector<16x32xf32>
    %29 = arith.subf %14, %28 : vector<16x32xf32>
    %cst_13 = arith.constant 9.99999996E-13 : f32
    %30 = vector.broadcast %cst_13 : f32 to vector<16x1xf32>
    %31 = arith.addf %27, %30 : vector<16x1xf32>
    %32 = math.rsqrt %31 : vector<16x1xf32>
    %33 = vector.broadcast %32 : vector<16x1xf32> to vector<16x32xf32>
    %34 = arith.mulf %29, %33 : vector<16x32xf32>
    %c0_14 = arith.constant 0 : index
    %c0_15 = arith.constant 0 : index
    %35 = vector.load %arg4[%c0_14, %c0_15] : memref<1x32xf32, #tpu.memory_space<vmem>>, vector<1x32xf32>
    %36 = vector.broadcast %35 : vector<1x32xf32> to vector<16x32xf32>
    %37 = arith.mulf %34, %36 : vector<16x32xf32>
    %c0_16 = arith.constant 0 : index
    %c0_17 = arith.constant 0 : index
    %38 = vector.load %arg5[%c0_16, %c0_17] : memref<1x32xf32, #tpu.memory_space<vmem>>, vector<1x32xf32>
    %39 = vector.broadcast %38 : vector<1x32xf32> to vector<16x32xf32>
    %40 = arith.addf %37, %39 : vector<16x32xf32>
    %41 = arith.truncf %40 : vector<16x32xf32> to vector<16x32xbf16>
    %c0_18 = arith.constant 0 : index
    %c0_19 = arith.constant 0 : index
    %42 = vector.load %arg6[%c0_18, %c0_19] : memref<16x32xbf16, #tpu.memory_space<vmem>>, vector<16x32xbf16>
    tpu.vector_store %arg6[%c0_18, %c0_19], %41 {strides = array<i32>} : memref<16x32xbf16, #tpu.memory_space<vmem>>, vector<16x32xbf16>,
    return
  }
  func.func @transform_0(%arg0: i32) -> (i32, i32) {
    %c0_i32 = arith.constant 0 : i32
    %c0_i32_0 = arith.constant 0 : i32
    return %arg0, %c0_i32 : i32, i32
  }
  func.func @transform_1(%arg0: i32) -> (i32, i32) {
    %c0_i32 = arith.constant 0 : i32
    %c0_i32_0 = arith.constant 0 : i32
    %c0_i32_1 = arith.constant 0 : i32
    return %c0_i32, %c0_i32_0 : i32, i32
  }
  func.func @transform_2(%arg0: i32) -> (i32, i32) {
    %c0_i32 = arith.constant 0 : i32
    %c0_i32_0 = arith.constant 0 : i32
    %c0_i32_1 = arith.constant 0 : i32
    return %c0_i32, %c0_i32_0 : i32, i32
  }
  func.func @transform_3(%arg0: i32) -> (i32, i32) {
    %c0_i32 = arith.constant 0 : i32
    %c0_i32_0 = arith.constant 0 : i32
    %c0_i32_1 = arith.constant 0 : i32
    return %c0_i32, %c0_i32_0 : i32, i32
  }
  func.func @transform_4(%arg0: i32) -> (i32, i32) {
    %c0_i32 = arith.constant 0 : i32
    %c0_i32_0 = arith.constant 0 : i32
    %c0_i32_1 = arith.constant 0 : i32
    return %c0_i32, %c0_i32_0 : i32, i32
  }
  func.func @transform_5(%arg0: i32) -> (i32, i32) {
    %c0_i32 = arith.constant 0 : i32
    %c0_i32_0 = arith.constant 0 : i32
    return %arg0, %c0_i32 : i32, i32
  }
}

</mosaic_0001>

<bundles_post_ra>
// kernel: bert_only_mlm_head.2
= control target key start
LH: loop header
LB: loop body
LE: loop exit
PB: predicated region body
PF: predicated region fallthrough
CT: control target
= control target key end

     0   :  { %10 = vsyncpa [#allocation3], 0  ;;  %s474_s0 = inlined_call_operand.hbm [shape: f32[16,32], index: 0, kind: input, shape index: {}]   ;;  %s475_s1 = inlined_call_operand.hbm [shape: bf16[32,32], index: 1, kind: input, shape index: {}]   ;;  %s476_s2 = inlined_call_operand.vmem [shape: f32[1,32], index: 2, kind: input, shape index: {}]   ;;  %s477_s3 = inlined_call_operand.vmem [shape: f32[1,32], index: 3, kind: input, shape index: {}]   ;;  %s478_s4 = inlined_call_operand.hbm [shape: f32[1,32], index: 4, kind: input, shape index: {}]   ;;  %s479_s5 = inlined_call_operand.vmem [shape: bf16[16,32], index: 5, kind: output, shape index: {}]  }
   0x1   :  { %11 = vsyncpa [#allocation5], 0  ;;  %s29_s20 = sshll.u32 %s475_s1, 4  ;;  %s385_s21 = smov [#allocation4]   ;;  %s30_s20 = int_to_ptr.hbm [resolvable:$true] %s29_s20 }
   0x2   :  { %s31_s22 = sshll.u32 %s385_s21, 4  ;;  %s16_s25 = sshll.u32 %s474_s0, 4  ;;  %s32_s22 = int_to_ptr.vmem [resolvable:$true] %s31_s22  ;;  %s17_s25 = int_to_ptr.hbm [resolvable:$true] %s16_s25 }
   0x3   :  { %s386_s26 = smov 64   ;;  %s387_s27 = smov 4  }
   0x4   :  { %37 = dma.hbm_to_vmem [thread:$0]  %s30_s20, 256, %s32_s22, [#allocation5], %s386_s26, %s386_s26, %s387_s27  }
   0x5   :  { %s388_s28 = smov [#allocation2]   ;;  %s389_s30 = smov 128  }
   0x6   :  { %s18_s29 = sshll.u32 %s388_s28, 4  ;;  %s390_s6 = smov 8   ;;  %s19_s29 = int_to_ptr.vmem [resolvable:$true] %s18_s29 }
   0x7   :  { %24 = dma.hbm_to_vmem [thread:$0]  %s17_s25, 256, %s19_s29, [#allocation3], %s389_s30, %s389_s30, %s390_s6  }
   0x8   :  { %s47_s8 = sshll.u32 %s478_s4, 4  ;;  %s391_s9 = smov [#allocation6]   ;;  %s48_s8 = int_to_ptr.hbm [resolvable:$true] %s47_s8 }
   0x9   :  { %s49_s10 = sshll.u32 %s391_s9, 4  ;;  %s50_s10 = int_to_ptr.vmem [resolvable:$true] %s49_s10 }
   0xa   :  { %52 = dma.hbm_to_vmem [thread:$0]  %s48_s8, 16, %s50_s10, [#allocation5]  }
   0xb   :  { %381 = dma.done.wait [#allocation3], 256  }
   0xc   :  { %382 = vsyncadd [#allocation3], 4294967040 }
   0xd   :  { %383 = dma.done.wait [#allocation5], 272  }
   0xe   :  { %384 = vsyncadd [#allocation5], 4294967024  ;;  %v287_v0 = vld [vmem:[#allocation4 + $0x8] sm:$0xff]  ;;  %v286_v1 = vld [vmem:[#allocation4] sm:$0xff]  ;;  %vm89_vm0 = vcmask 261120   ;;  %vm266_vm14 = vcmask 257024  }
   0xf   :  { %v66_v2 = vld [vmem:[#allocation2] sm:$0xff]  ;;  %99 = vmatpush.bf16.msra.mxu0 %v287_v0  ;;  %v67_v3 = vld [vmem:[#allocation2 + $0x8] sm:$0xff] }
  0x10   :  { %v68_v4 = vpack.c.bf16 %v67_v3, %v66_v2  ;;  %v296_v5 = vld [vmem:[%s476_s2] ss:$0 sm:$0xff] }
  0x13   :  { %100 = vmatpush.bf16.msra.mxu0 %v286_v1 }
  0x16   :  { %283 = vmatmul.msk.bf16.vlgmr.msra.gmra.mxu0 %vm89_vm0, %v68_v4 }
  0x93   :  { %v102_v6 = vpop.f32.mrf.mxu0 }
  0x94   :  { %v436_v7 = vadd.f32 %v296_v5, %v102_v6 }
  0x96   :  { %v109_v8 = vmul.f32 0.70710677, %v436_v7 }
  0x98   :  { %v111_v9 = vmul.f32 %v109_v8, %v109_v8 }
  0x9a   :  { %v112_v10 = vmin.f32 %v111_v9, 16.0 }
  0x9b   :  { %v104_v11 = vpop.f32.mrf.mxu0 }
  0x9c   :  { %v113_v12 = vmul.f32 2.1237322e-06, %v112_v10  ;;  %v124_v13 = vmul.f32 3.8918573e-05, %v112_v10  ;;  %v439_v14 = vadd.f32 %v296_v5, %v104_v11 }
  0x9e   :  { %v114_v15 = vadd.f32 0.00028619796, %v113_v12  ;;  %v125_v16 = vadd.f32 0.001143296, %v124_v13  ;;  %v442_v17 = vmul.f32 0.70710677, %v439_v14 }
  0x9f   :  { %v107_v13 = vmul.f32 0.5, %v436_v7 }
  0xa0   :  { %v115_v18 = vmul.f32 %v114_v15, %v112_v10  ;;  %v126_v19 = vmul.f32 %v125_v16, %v112_v10  ;;  %v151_v20 = vmul.f32 %v442_v17, %v442_v17 }
  0xa2   :  { %v127_v21 = vadd.f32 0.014752088, %v126_v19  ;;  %v116_v22 = vadd.f32 0.0036580483, %v115_v18  ;;  %v152_v23 = vmin.f32 %v151_v20, 16.0 }
  0xa4   :  { %v128_v24 = vmul.f32 %v127_v21, %v112_v10  ;;  %v153_v25 = vmul.f32 2.1237322e-06, %v152_v23  ;;  %v164_v26 = vmul.f32 3.8918573e-05, %v152_v23  ;;  %v117_v28 = vmul.f32 %v116_v22, %v112_v10 }
  0xa6   :  { %v129_v27 = vadd.f32 0.112945676, %v128_v24  ;;  %v154_v29 = vadd.f32 0.00028619796, %v153_v25  ;;  %v165_v30 = vadd.f32 0.001143296, %v164_v26 }
  0xa7   :  { %v118_v35 = vadd.f32 0.05243302, %v117_v28  ;;  %v108_v26 = vmul.f32 0.5, %v439_v14 }
  0xa8   :  { %v130_v31 = vmul.f32 %v129_v27, %v112_v10  ;;  %v155_v32 = vmul.f32 %v154_v29, %v152_v23  ;;  %v166_v33 = vmul.f32 %v165_v30, %v152_v23 }
  0xa9   :  { %v119_v41 = vmul.f32 %v118_v35, %v112_v10 }
  0xaa   :  { %v131_v34 = vadd.f32 0.4994258, %v130_v31  ;;  %v167_v36 = vadd.f32 0.014752088, %v166_v33  ;;  %v156_v38 = vadd.f32 0.0036580483, %v155_v32 }
  0xab   :  { %v120_v45 = vadd.f32 0.18741608, %v119_v41  ;;  %v392_v31 = vmov 32.0  }
  0xac   :  { %v132_v37 = vmul.f32 %v131_v34, %v112_v10  ;;  %v168_v39 = vmul.f32 %v167_v36, %v152_v23  ;;  %v157_v43 = vmul.f32 %v156_v38, %v152_v23 }
  0xad   :  { %v121_v50 = vmul.f32 %v120_v45, %v112_v10 }
  0xae   :  { %v133_v40 = vadd.f32 1.0, %v132_v37  ;;  %v169_v42 = vadd.f32 0.112945676, %v168_v39  ;;  %v158_v47 = vadd.f32 0.05243302, %v157_v43 }
  0xaf   :  { %v122_v56 = vadd.f32 1.1283791, %v121_v50 }
  0xb0   :  { %299 = vrcp.f32 %v133_v40  ;;  %v170_v44 = vmul.f32 %v169_v42, %v152_v23  ;;  %v159_v53 = vmul.f32 %v158_v47, %v152_v23  ;;  %v145_v55 = vand.u32 2147483648, %v133_v40 }
  0xb1   :  { %v143_v58 = vand.u32 2147483647, %v133_v40  ;;  %vm139_vm2 = vweird.f32 %v133_v40  ;;  %v123_v63 = vmul.f32 %v122_v56, %v109_v8 }
  0xb2   :  { %v171_v46 = vadd.f32 0.4994258, %v170_v44  ;;  %v160_v59 = vadd.f32 0.18741608, %v159_v53  ;;  %v146_v61 = vor.u32 1.1754944e-38, %v145_v55 }
  0xb3   :  { %vm144_vm4 = vcmp.eq.f32.partialorder %v143_v58, 8.507059e+37 }
  0xb4   :  { %v172_v48 = vmul.f32 %v171_v46, %v152_v23  ;;  %v161_v2 = vmul.f32 %v160_v59, %v152_v23 }
  0xb6   :  { %v300_v49 = vpop.eup %299  ;;  %v173_v52 = vadd.f32 1.0, %v172_v48  ;;  %v162_v10 = vadd.f32 1.1283791, %v161_v2 }
  0xb7   :  { %v135_v51 = vmul.f32 %v300_v49, %v133_v40  ;;  %vm140_vm1 = vweird.f32 %v300_v49 }
  0xb8   :  { %301 = vrcp.f32 %v173_v52  ;;  %vm141_vm3 = vmor %vm139_vm2, %vm140_vm1  ;;  %v185_v6 = vand.u32 2147483648, %v173_v52  ;;  %v183_v12 = vand.u32 2147483647, %v173_v52  ;;  %vm179_vm6 = vweird.f32 %v173_v52 }
  0xb9   :  { %v136_v54 = vsub.f32 1.0, %v135_v51  ;;  %v163_v19 = vmul.f32 %v162_v10, %v442_v17  ;;  %303 = vrcp.f32 %v392_v31 }
  0xba   :  { %v186_v8 = vor.u32 1.1754944e-38, %v185_v6  ;;  %vm184_vm8 = vcmp.eq.f32.partialorder %v183_v12, 8.507059e+37 }
  0xbb   :  { %v137_v57 = vmul.f32 %v300_v49, %v136_v54 }
  0xbd   :  { %v138_v60 = vadd.f32 %v300_v49, %v137_v57 }
  0xbe   :  { %v302_v62 = vpop.eup %301 }
  0xbf   :  { %v142_v0 = vsel %vm141_vm3, %v300_v49, %v138_v60  ;;  %v175_v3 = vmul.f32 %v302_v62, %v173_v52  ;;  %vm180_vm5 = vweird.f32 %v302_v62  ;;  %v304_v32 = vpop.eup %303 }
  0xc0   :  { %v147_v1 = vsel %vm144_vm4, %v146_v61, %v142_v0  ;;  %vm181_vm7 = vmor %vm179_vm6, %vm180_vm5  ;;  %v202_v33 = vmul.f32 32.0, %v304_v32  ;;  %vm206_vm9 = vweird.f32 %v304_v32  ;;  %v297_v61 = vld [vmem:[%s477_s3] ss:$0 sm:$0xff] }
  0xc1   :  { %v148_v4 = vmul.f32 %v147_v1, %v123_v63  ;;  %v176_v5 = vsub.f32 1.0, %v175_v3  ;;  %v298_v0 = vld [vmem:[#allocation6] ss:$0 sm:$0xff] }
  0xc2   :  { %v203_v34 = vsub.f32 1.0, %v202_v33 }
  0xc3   :  { %v284_v9 = vclamps-f32 %v148_v4, 1.0  ;;  %v177_v11 = vmul.f32 %v302_v62, %v176_v5 }
  0xc4   :  { %v204_v35 = vmul.f32 %v304_v32, %v203_v34 }
  0xc5   :  { %v191_v15 = vadd.f32 1.0, %v284_v9  ;;  %v178_v16 = vadd.f32 %v302_v62, %v177_v11 }
  0xc6   :  { %v205_v14 = vadd.f32 %v304_v32, %v204_v35 }
  0xc7   :  { %v447_v18 = vmul.f32 %v191_v15, %v107_v13  ;;  %v182_v20 = vsel %vm181_vm7, %v302_v62, %v178_v16 }
  0xc8   :  { %v187_v21 = vsel %vm184_vm8, %v186_v8, %v182_v20  ;;  %v207_v36 = vsel %vm206_vm9, %v304_v32, %v205_v14 }
  0xc9   :  { %v195_v22 = vsel %vm89_vm0, %v447_v18, 0.0  ;;  %v210_v23 = vmul.f32 %v447_v18, %v447_v18  ;;  %v188_v24 = vmul.f32 %v187_v21, %v163_v19 }
  0xca   :  { %196 = vadd.xlane.f32.xlu0 %v195_v22 }
  0xcb   :  { %v212_v7 = vsel %vm89_vm0, %v210_v23, 0.0  ;;  %v285_v25 = vclamps-f32 %v188_v24, 1.0 }
  0xcc   :  { %213 = vadd.xlane.f32.xlu1 %v212_v7 }
  0xcd   :  { %v192_v27 = vadd.f32 1.0, %v285_v25 }
  0xcf   :  { %v456_v28 = vmul.f32 %v192_v27, %v108_v26 }
  0xd1   :  { %v198_v17 = vsel %vm89_vm0, %v456_v28, 0.0  ;;  %v211_v29 = vmul.f32 %v456_v28, %v456_v28 }
  0xd2   :  { %199 = vadd.xlane.f32.xlu0 %v198_v17 }
  0xd3   :  { %v215_v30 = vsel %vm89_vm0, %v211_v29, 0.0 }
  0xd4   :  { %216 = vadd.xlane.f32.xlu1 %v215_v30 }
 0x13d   :  { %v197_v37 = vpop.xlane.xlu0 %196 }
 0x13e   :  { %v208_v38 = vmul.f32 %v207_v36, %v197_v37 }
 0x13f   :  { %v214_v39 = vpop.xlane.xlu1 %213 }
 0x140   :  { %v220_v40 = vmul.f32 %v208_v38, %v208_v38  ;;  %v218_v41 = vmul.f32 %v214_v39, %v207_v36  ;;  %v226_v60 = vsub.f32 %v447_v18, %v208_v38 }
 0x142   :  { %v222_v42 = vsub.f32 %v218_v41, %v220_v40 }
 0x144   :  { %v224_v43 = vmax.f32 %v222_v42, 0.0 }
 0x145   :  { %v200_v45 = vpop.xlane.xlu0 %199 }
 0x146   :  { %v228_v44 = vadd.f32 1e-12, %v224_v43  ;;  %v209_v46 = vmul.f32 %v207_v36, %v200_v45 }
 0x147   :  { %v217_v47 = vpop.xlane.xlu1 %216 }
 0x148   :  { %305 = vrsqrt.f32 %v228_v44  ;;  %v221_v48 = vmul.f32 %v209_v46, %v209_v46  ;;  %v219_v49 = vmul.f32 %v217_v47, %v207_v36  ;;  %vm236_vm11 = vweird.f32 %v228_v44 }
 0x149   :  { %v227_v11 = vsub.f32 %v456_v28, %v209_v46 }
 0x14a   :  { %v223_v50 = vsub.f32 %v219_v49, %v221_v48 }
 0x14c   :  { %v225_v51 = vmax.f32 %v223_v50, 0.0 }
 0x14e   :  { %v306_v52 = vpop.eup %305  ;;  %v229_v54 = vadd.f32 1e-12, %v225_v51 }
 0x14f   :  { %v231_v53 = vmul.f32 %v306_v52, %v228_v44  ;;  %vm237_vm10 = vweird.f32 %v306_v52 }
 0x150   :  { %307 = vrsqrt.f32 %v229_v54  ;;  %vm238_vm12 = vmor %vm236_vm11, %vm237_vm10  ;;  %vm246_vm15 = vweird.f32 %v229_v54 }
 0x151   :  { %v232_v55 = vmul.f32 %v306_v52, %v231_v53 }
 0x153   :  { %v233_v56 = vmul.f32 0.5, %v232_v55 }
 0x155   :  { %v234_v57 = vsub.f32 1.5, %v233_v56 }
 0x156   :  { %v308_v58 = vpop.eup %307 }
 0x157   :  { %v235_v59 = vmul.f32 %v306_v52, %v234_v57  ;;  %v241_v62 = vmul.f32 %v308_v58, %v229_v54  ;;  %vm247_vm13 = vweird.f32 %v308_v58 }
 0x158   :  { %vm248_vm0 = vmor %vm246_vm15, %vm247_vm13 }
 0x159   :  { %v239_v63 = vsel %vm238_vm12, %v306_v52, %v235_v59  ;;  %v242_v2 = vmul.f32 %v308_v58, %v241_v62 }
 0x15a   :  { %v250_v1 = vmul.f32 %v239_v63, %v226_v60 }
 0x15b   :  { %v243_v4 = vmul.f32 0.5, %v242_v2 }
 0x15c   :  { %v256_v3 = vmul.f32 %v297_v61, %v250_v1 }
 0x15d   :  { %v244_v6 = vsub.f32 1.5, %v243_v4 }
 0x15e   :  { %v262_v5 = vadd.f32 %v298_v0, %v256_v3 }
 0x15f   :  { %v245_v10 = vmul.f32 %v308_v58, %v244_v6 }
 0x160   :  { %v264_v9 = vpack.c.bf16 %v262_v5, %v262_v5 }
 0x161   :  { %v249_v12 = vsel %vm248_vm0, %v308_v58, %v245_v10 }
 0x162   :  { %267 = vst.msk [vmem:[%s479_s5] sm:$0xf] %vm266_vm14, %v264_v9  ;;  %v251_v13 = vmul.f32 %v249_v12, %v227_v11 }
 0x164   :  { %v257_v15 = vmul.f32 %v297_v61, %v251_v13 }
 0x166   :  { %v263_v16 = vadd.f32 %v298_v0, %v257_v15 }
 0x168   :  { %v265_v8 = vpack.c.bf16 %v263_v16, %v263_v16 }
 0x16a   :  { %268 = vst.msk [vmem:[%s479_s5 + $0x4] sm:$0xf] %vm266_vm14, %v265_v8 }
 0x16b   :  { %273 = vsyncpa [#allocation3], 1 }
 0x16c   :  { %274 = vsyncpa [#allocation5], 1 }

// kernel: bert_only_mlm_head.3
= control target key start
LH: loop header
LB: loop body
LE: loop exit
PB: predicated region body
PF: predicated region fallthrough
CT: control target
= control target key end

     0   :  { %8 = vsyncpa [#allocation3], 0  ;;  %s381_s0 = inlined_call_operand.vmem [shape: bf16[16,32], index: 0, kind: input, shape index: {}]   ;;  %s382_s1 = inlined_call_operand.hbm [shape: bf16[32,512], index: 1, kind: input, shape index: {}]   ;;  %s383_s2 = inlined_call_operand.hbm [shape: f32[1,512], index: 2, kind: input, shape index: {}]   ;;  %s384_s3 = inlined_call_operand.hbm [shape: bf16[16,512], index: 3, kind: output, shape index: {}]  }
   0x1   :  { %9 = vsyncpa [#allocation6], 0 }
   0x2   :  { %10 = vsyncpa [#allocation4], 0  ;;  %s17_s14 = sshll.u32 %s382_s1, 4  ;;  %s338_s15 = smov [#allocation2]   ;;  %s18_s14 = int_to_ptr.hbm [resolvable:$true] %s17_s14 }
   0x3   :  { %s19_s16 = sshll.u32 %s338_s15, 4  ;;  %s31_s19 = sshll.u32 %s383_s2, 4  ;;  %s20_s16 = int_to_ptr.vmem [resolvable:$true] %s19_s16  ;;  %s32_s19 = int_to_ptr.hbm [resolvable:$true] %s31_s19 }
   0x4   :  { %s339_s20 = smov 256   ;;  %s340_s21 = smov 16  }
   0x5   :  { %25 = dma.hbm_to_vmem [thread:$0]  %s18_s14, 1024, %s20_s16, [#allocation3], %s339_s20, %s339_s20, %s340_s21  }
   0x6   :  { %s341_s22 = smov [#allocation5]  }
   0x7   :  { %s33_s23 = sshll.u32 %s341_s22, 4  ;;  %s34_s23 = int_to_ptr.vmem [resolvable:$true] %s33_s23 }
   0x8   :  { %36 = dma.hbm_to_vmem [thread:$0]  %s32_s19, 64, %s34_s23, [#allocation6]  }
   0x9   :  { %332 = dma.done.wait [#allocation3], 1024  }
   0xa   :  { %333 = vsyncadd [#allocation3], 4294966272 }
   0xb   :  { %334 = dma.done.wait [#allocation6], 64  }
   0xc   :  { %335 = vsyncadd [#allocation6], 4294967232  ;;  %v228_v0 = vld [vmem:[#allocation2 + $0x20] sm:$0xf]  ;;  %v253_v1 = vld [vmem:[#allocation2 + $0x2c] sm:$0xf0] }
   0xd   :  { %v251_v2 = vld [vmem:[#allocation2 + $0x24] sm:$0xf]  ;;  %v229_v3 = vor.u32 %v253_v1, %v228_v0  ;;  %v230_v4 = vld [vmem:[#allocation2 + $0x30] sm:$0xf0]  ;;  %v236_v5 = vld [vmem:[#allocation2 + $0x28] sm:$0xf] }
   0xe   :  { %v254_v6 = vld [vmem:[#allocation2 + $0x34] sm:$0xf0]  ;;  %v233_v7 = vor.u32 %v251_v2, %v230_v4  ;;  %v252_v9 = vld [vmem:[#allocation2 + $0x2c] sm:$0xf]  ;;  %v238_v10 = vld [vmem:[#allocation2 + $0x38] sm:$0xf0] }
   0xf   :  { %v237_v8 = vor.u32 %v254_v6, %v236_v5  ;;  %v212_v11 = vld [vmem:[#allocation2] sm:$0xf]  ;;  %126 = vmatpush.bf16.msra.mxu0 %v229_v3  ;;  %v241_v12 = vor.u32 %v252_v9, %v238_v10  ;;  %v249_v13 = vld [vmem:[#allocation2 + $0xc] sm:$0xf0]  ;;  %v247_v14 = vld [vmem:[#allocation2 + $0x4] sm:$0xf] }
  0x10   :  { %v214_v15 = vld [vmem:[#allocation2 + $0x10] sm:$0xf0]  ;;  %140 = vmatpush.bf16.msra.mxu1 %v233_v7  ;;  %v213_v16 = vor.u32 %v249_v13, %v212_v11  ;;  %v220_v18 = vld [vmem:[#allocation2 + $0x8] sm:$0xf]  ;;  %v250_v19 = vld [vmem:[#allocation2 + $0x14] sm:$0xf0] }
  0x11   :  { %154 = vmatpush.bf16.msra.mxu2 %v237_v8  ;;  %v217_v17 = vor.u32 %v247_v14, %v214_v15  ;;  %v248_v20 = vld [vmem:[#allocation2 + $0xc] sm:$0xf]  ;;  %168 = vmatpush.bf16.msra.mxu3 %v241_v12  ;;  %v221_v21 = vor.u32 %v250_v19, %v220_v18  ;;  %v222_v22 = vld [vmem:[#allocation2 + $0x18] sm:$0xf0]  ;;  %v246_v24 = vld [vmem:[%s381_s0] sm:$0xff]  ;;  %vm116_vm0 = vcmask 261120  }
  0x12   :  { %v225_v23 = vor.u32 %v248_v20, %v222_v22  ;;  %v61_v25 = vld [vmem:[#allocation5] sm:$0xf]  ;;  %s342_s0 = smov [#allocation7]   ;;  %s190_s27 = sshll.u32 %s384_s3, 4  ;;  %s191_s27 = int_to_ptr.hbm [resolvable:$true] %s190_s27 }
  0x13   :  { %127 = vmatpush.bf16.msra.mxu0 %v213_v16  ;;  %v63_v26 = vperm.slane %v61_v25, 0  ;;  %v64_v27 = vperm.slane %v61_v25, 1  ;;  %v65_v33 = vperm.slane %v61_v25, 2  ;;  %v66_v34 = vperm.slane %v61_v25, 3  ;;  %s188_s24 = sshll.u32 %s342_s0, 4  ;;  %s189_s24 = int_to_ptr.vmem [resolvable:$true] %s188_s24 }
  0x14   :  { %141 = vmatpush.bf16.msra.mxu1 %v217_v17 }
  0x15   :  { %155 = vmatpush.bf16.msra.mxu2 %v221_v21  ;;  %169 = vmatpush.bf16.msra.mxu3 %v225_v23 }
  0x16   :  { %242 = vmatmul.msk.bf16.vlgmr.msra.gmra.mxu0 %vm116_vm0, %v246_v24 }
  0x17   :  { %243 = vmatmul.msk.bf16.vlgmr.msra.gmra.mxu1 %vm116_vm0, %v246_v24 }
  0x18   :  { %244 = vmatmul.msk.bf16.vlgmr.msra.gmra.mxu2 %vm116_vm0, %v246_v24  ;;  %245 = vmatmul.msk.bf16.vlgmr.msra.gmra.mxu3 %vm116_vm0, %v246_v24 }
  0x93   :  { %v129_v28 = vpop.f32.mrf.mxu0 }
  0x94   :  { %v130_v29 = vadd.f32 %v129_v28, %v63_v26  ;;  %v143_v30 = vpop.f32.mrf.mxu1 }
  0x95   :  { %v144_v31 = vadd.f32 %v143_v30, %v64_v27 }
  0x97   :  { %v176_v32 = vpack.c.bf16 %v144_v31, %v130_v29 }
  0x99   :  { %180 = vst [vmem:[#allocation7] sm:$0xff] %v176_v32 }
  0x9b   :  { %v157_v35 = vpop.f32.mrf.mxu2  ;;  %v171_v37 = vpop.f32.mrf.mxu3 }
  0x9c   :  { %v158_v36 = vadd.f32 %v157_v35, %v65_v33  ;;  %v131_v38 = vpop.f32.mrf.mxu0  ;;  %v172_v39 = vadd.f32 %v171_v37, %v66_v34  ;;  %v145_v41 = vpop.f32.mrf.mxu1 }
  0x9d   :  { %v132_v40 = vadd.f32 %v131_v38, %v63_v26  ;;  %v146_v42 = vadd.f32 %v145_v41, %v64_v27 }
  0x9e   :  { %v177_v43 = vpack.c.bf16 %v172_v39, %v158_v36 }
  0x9f   :  { %v178_v44 = vpack.c.bf16 %v146_v42, %v132_v40 }
  0xa0   :  { %181 = vst [vmem:[#allocation7 + $0x8] sm:$0xff] %v177_v43 }
  0xa1   :  { %182 = vst [vmem:[#allocation7 + $0x10] sm:$0xff] %v178_v44 }
  0xa3   :  { %v159_v45 = vpop.f32.mrf.mxu2  ;;  %v173_v47 = vpop.f32.mrf.mxu3 }
  0xa4   :  { %v160_v46 = vadd.f32 %v159_v45, %v65_v33  ;;  %v174_v48 = vadd.f32 %v173_v47, %v66_v34 }
  0xa6   :  { %v179_v49 = vpack.c.bf16 %v174_v48, %v160_v46 }
  0xa8   :  { %183 = vst [vmem:[#allocation7 + $0x18] sm:$0xff] %v179_v49 }
  0xa9   :  { %196 = dma.vmem_to_hbm [thread:$0]  %s189_s24, 512, %s191_s27, [#allocation4], %s339_s20, %s339_s20, %s340_s21  }
  0xaa   :  { %336 = dma.done.wait [#allocation4], 512  }
  0xab   :  { %337 = vsyncadd [#allocation4], 4294966784 }
  0xac   :  { %201 = vsyncpa [#allocation3], 1 }
  0xad   :  { %202 = vsyncpa [#allocation6], 1 }
  0xae   :  { %203 = vsyncpa [#allocation4], 1 }

</bundles_post_ra>
